<compile_context>
chip_gen: v6e
topology: v6e:2x2x1
jax: 0.10.0
libtpu: 0.0.40
codegen_flags: <defaults>
</compile_context>

<pallas_src>
import functools

import jax
import jax.numpy as jnp
import numpy as np
from jax import lax
from jax.experimental import pallas as pl
from jax.experimental.pallas import tpu as pltpu


def _lane_pack_target():
    """MXU width target for lane packing: 256 on v6e/v7x, 128 on v5e / unknown."""
    try:
        ver = str(getattr(pltpu.get_tpu_info(), "chip_version", "")).lower()
    except Exception:
        return 128
    if ("6" in ver) or ("7" in ver):
        return 256
    return 128


def _basic_block_kernel(x_ref, t1_ref, b1_ref, t2_ref, b2_ref, o_ref, *, h_img):
    """Fused conv3x3+bn+relu -> conv3x3+bn -> +identity -> relu on one (M, L) slab.

    x_ref  : (M, L) bf16       activations; M = G_m*H rows, L = G_l*W*C lanes
    t*_ref : (3L, L) bf16      banded conv weights, tap-major stacked, BN scale folded
    b*_ref : (1, L) f32        folded BN shift, tiled along lanes
    o_ref  : (M, L) bf16
    """
    m, l = x_ref.shape
    x = x_ref[...].astype(jnp.float32)                   # residual kept in f32

    # Per-image row index (hoisted once): masks zero the halo rows so the sublane roll
    # never leaks data across packed-image boundaries (or wraps the slab).
    rows = lax.broadcasted_iota(jnp.int32, (m, l), 0) % h_img
    keep_prev = rows >= 1                 # row r-1 exists inside this image
    keep_next = rows < (h_img - 1)        # row r+1 exists inside this image

    def conv_bn(a, t_ref, b_ref):
        # a[r-1] / a[r+1] via XLU sublane rotation + VPU select (no concat relayout).
        prev_row = jnp.where(keep_prev, pltpu.roll(a, 1, axis=0), 0.0)
        next_row = jnp.where(keep_next, pltpu.roll(a, m - 1, axis=0), 0.0)
        # Single K = 3L contraction: columns ordered [kh=0 | kh=1 | kh=2] to match the
        # tap-major row stacking of t_ref.
        lhs = jnp.concatenate([prev_row, a, next_row], axis=-1).astype(jnp.bfloat16)
        acc = jnp.dot(lhs, t_ref[...], preferred_element_type=jnp.float32)
        return acc + b_ref[...]

    h1 = jnp.maximum(conv_bn(x, t1_ref, b1_ref), 0.0)     # conv1 + bn1 + relu
    h2 = conv_bn(h1, t2_ref, b2_ref)                      # conv2 + bn2
    o_ref[...] = jnp.maximum(h2 + x, 0.0).astype(o_ref.dtype)   # + identity, relu


def basic_block_pallas(x_nchw, w1, w2, bn1, bn2, eps=1e-5):
    """x_nchw: (N, C, H, W) f32.  w1, w2: (Cout, Cin, 3, 3) PyTorch layout.
    bn1, bn2: dicts with gamma/beta/mean/var of shape (Cout,)."""
    N, C, H, W = x_nchw.shape
    Cout = w1.shape[0]
    # TODO(synk): projection/downsample shortcut (stride != 1 or in_planes != planes)
    # is not implemented; this module instance uses the identity shortcut.
    assert Cout == C and w1.shape == (C, C, 3, 3) and w2.shape == (C, C, 3, 3)

    # --- lane packing: G_l whole images on the lane axis, L = G_l*W*C ---
    WC = W * C
    lane_target = _lane_pack_target()
    G_l = max(1, min(N, lane_target // WC)) if WC <= lane_target else 1
    while N % G_l:
        G_l -= 1
    L = G_l * WC

    # --- M-axis packing: fold further images into the matmul M dimension ---
    rem = N // G_l
    m_target = 256
    G_m = max(1, min(rem, m_target // H)) if H <= m_target else 1
    while rem % G_m:
        G_m -= 1
    NG = rem // G_m
    M = G_m * H

    # --- fold BN (inference form) into per-channel scale / shift ---
    def fold(bn):
        scale = bn["gamma"] / jnp.sqrt(bn["var"] + eps)
        shift = bn["beta"] - bn["mean"] * scale
        return scale.astype(jnp.float32), shift.astype(jnp.float32)

    s1, sh1 = fold(bn1)
    s2, sh2 = fold(bn2)

    # --- banded (Toeplitz) weights: (3L, L) per conv, tap-major, BN scale folded ---
    # band[kw, wi, wo] = 1  iff  wi == wo + kw - 1   (width padding=1 handled by omission)
    band = (np.arange(W)[None, :, None]
            == np.arange(W)[None, None, :] + np.arange(3)[:, None, None] - 1)
    band = jnp.asarray(band.astype(np.float32))                       # (3, W, W)
    eye_g = jnp.eye(G_l, dtype=jnp.float32)

    def banded_weights(w, scale):
        # (Cout, Cin, 3, 3) -> (kh, kw, ci, co), fold BN scale into co
        wf = jnp.transpose(w, (2, 3, 1, 0)) * scale[None, None, None, :]
        t = jnp.einsum("dab,hdio->haibo", band, wf).reshape(3, WC, WC)
        # block-diagonal replicate for the G_l lane-packed images
        t = jnp.einsum("gq,hab->hgaqb", eye_g, t).reshape(3, L, L)
        # tap-major stack -> single (M, 3L) @ (3L, L) matmul in the kernel
        return t.reshape(3 * L, L).astype(jnp.bfloat16)

    t1 = banded_weights(w1, s1)
    t2 = banded_weights(w2, s2)
    b1 = jnp.tile(sh1, G_l * W).reshape(1, L)
    b2 = jnp.tile(sh2, G_l * W).reshape(1, L)

    # --- activations: NCHW -> (NG, M, L) bf16 slabs ---
    # row index = g_m*H + h ; lane index = g_l*W*C + w*C + c
    x_slab = (jnp.transpose(x_nchw, (0, 2, 3, 1))        # NHWC
              .reshape(NG, G_m, G_l, H, W, C)
              .transpose(0, 1, 3, 2, 4, 5)               # (NG, G_m, H, G_l, W, C)
              .reshape(NG, M, L)
              .astype(jnp.bfloat16))

    out_slab = pl.pallas_call(
        functools.partial(_basic_block_kernel, h_img=H),
        out_shape=jax.ShapeDtypeStruct((NG, M, L), jnp.bfloat16),
        grid_spec=pltpu.PrefetchScalarGridSpec(
            num_scalar_prefetch=0,
            grid=(NG,),
            in_specs=[
                pl.BlockSpec((None, M, L), lambda i: (i, 0, 0)),    # activations (bf16)
                # Constant index_maps: weights/bias stay VMEM-resident.  For large L,
                # add pipeline_mode=pl.Buffered(1) here to avoid double-buffering them.
                pl.BlockSpec((3 * L, L), lambda i: (0, 0)),         # conv1 banded weights
                pl.BlockSpec((1, L), lambda i: (0, 0)),             # bn1 shift
                pl.BlockSpec((3 * L, L), lambda i: (0, 0)),         # conv2 banded weights
                pl.BlockSpec((1, L), lambda i: (0, 0)),             # bn2 shift
            ],
            out_specs=pl.BlockSpec((None, M, L), lambda i: (i, 0, 0)),
        ),
        compiler_params=pltpu.CompilerParams(dimension_semantics=("parallel",)),
    )(x_slab, t1, b1, t2, b2)

    # --- back to NCHW (PyTorch convention), f32 ---
    out = (out_slab.astype(jnp.float32)
           .reshape(NG, G_m, H, G_l, W, C)
           .transpose(0, 1, 3, 2, 4, 5)                  # (NG, G_m, G_l, H, W, C)
           .reshape(N, H, W, C)
           .transpose(0, 3, 1, 2))
    return out


def basic_block_reference(x_nchw, w1, w2, bn1, bn2, eps=1e-5):
    """Pure-JAX f32 reference (lax.conv) for correctness checking."""
    x = jnp.transpose(x_nchw, (0, 2, 3, 1))          # NHWC
    w1_t = jnp.transpose(w1, (2, 3, 1, 0))           # HWIO
    w2_t = jnp.transpose(w2, (2, 3, 1, 0))
    dn = lax.conv_dimension_numbers(x.shape, w1_t.shape, ("NHWC", "HWIO", "NHWC"))

    def conv(y, w):
        return lax.conv_general_dilated(y, w, (1, 1), "SAME", dimension_numbers=dn)

    def bn(y, p):
        scale = p["gamma"] / jnp.sqrt(p["var"] + eps)
        shift = p["beta"] - p["mean"] * scale
        return y * scale + shift

    out = jax.nn.relu(bn(conv(x, w1_t), bn1))
    out = bn(conv(out, w2_t), bn2)
    out = jax.nn.relu(out + x)
    return jnp.transpose(out, (0, 3, 1, 2))


if __name__ == "__main__":
    # Shapes implied by the module: batch=2, in_planes=planes=4, spatial=16, stride=1.
    N, C, H, W = 2, 4, 16, 16
    key = jax.random.PRNGKey(0)
    kx, kw1, kw2, kg1, kb1, kg2, kb2, km1, kv1, km2, kv2 = jax.random.split(key, 11)

    x = jax.random.normal(kx, (N, C, H, W), jnp.float32)
    w1 = jax.random.normal(kw1, (C, C, 3, 3), jnp.float32) * 0.2
    w2 = jax.random.normal(kw2, (C, C, 3, 3), jnp.float32) * 0.2

    bn1 = {
        "gamma": 1.0 + 0.1 * jax.random.normal(kg1, (C,), jnp.float32),
        "beta": 0.1 * jax.random.normal(kb1, (C,), jnp.float32),
        "mean": 0.1 * jax.random.normal(km1, (C,), jnp.float32),
        "var": jnp.abs(jax.random.normal(kv1, (C,), jnp.float32)) + 0.5,
    }
    bn2 = {
        "gamma": 1.0 + 0.1 * jax.random.normal(kg2, (C,), jnp.float32),
        "beta": 0.1 * jax.random.normal(kb2, (C,), jnp.float32),
        "mean": 0.1 * jax.random.normal(km2, (C,), jnp.float32),
        "var": jnp.abs(jax.random.normal(kv2, (C,), jnp.float32)) + 0.5,
    }

    out = basic_block_pallas(x, w1, w2, bn1, bn2)
    out = jax.block_until_ready(out)

    ref = jax.block_until_ready(basic_block_reference(x, w1, w2, bn1, bn2))
    # Activations now travel HBM<->kernel as bf16 and the MXU operands are bf16
    # (f32 accumulation), so tolerance vs. the pure-f32 reference is loosened.
    np.testing.assert_allclose(np.asarray(out), np.asarray(ref), rtol=5e-2, atol=1e-1)

    assert out.shape == (N, C, H, W)
    print("KERNEL_OK")
</pallas_src>

<mosaic_0001>
module attributes {stable_mosaic.version = 11 : i64} {
  func.func @_basic_block_kernel(%arg0: i32, %arg1: memref<1x16x128xbf16, #tpu.memory_space<vmem>>, %arg2: memref<384x128xbf16, #tpu.memory_space<vmem>>, %arg3: memref<1x128xf32, #tpu.memory_space<vmem>>, %arg4: memref<384x128xbf16, #tpu.memory_space<vmem>>, %arg5: memref<1x128xf32, #tpu.memory_space<vmem>>, %arg6: memref<1x16x128xbf16, #tpu.memory_space<vmem>>) attributes {dimension_semantics = [#tpu.dimension_semantics<parallel>], iteration_bounds = array<i64: 1>, scalar_prefetch = 0 : i64, scratch_operands = 0 : i64, tpu.core_type = #tpu.core_type<tc>, window_params = [{transform_indices = @transform_0, window_bounds = array<i64: 1, 16, 128>}, {pipeline_mode = #tpu.pipeline_mode<synchronous>, transform_indices = @transform_1, window_bounds = array<i64: 384, 128>}, {pipeline_mode = #tpu.pipeline_mode<synchronous>, transform_indices = @transform_2, window_bounds = array<i64: 1, 128>}, {pipeline_mode = #tpu.pipeline_mode<synchronous>, transform_indices = @transform_3, window_bounds = array<i64: 384, 128>}, {pipeline_mode = #tpu.pipeline_mode<synchronous>, transform_indices = @transform_4, window_bounds = array<i64: 1, 128>}, {transform_indices = @transform_5, window_bounds = array<i64: 1, 16, 128>}]} {
    %c0 = arith.constant 0 : index
    %c0_0 = arith.constant 0 : index
    %c0_1 = arith.constant 0 : index
    %0 = vector.load %arg1[%c0, %c0_0, %c0_1] : memref<1x16x128xbf16, #tpu.memory_space<vmem>>, vector<1x16x128xbf16>
    %1 = vector.shape_cast %0 : vector<1x16x128xbf16> to vector<16x128xbf16>
    %2 = arith.extf %1 : vector<16x128xbf16> to vector<16x128xf32>
    %3 = tpu.iota {dimensions = array<i32: 0>} : vector<16x128xi32>
    %c16_i32 = arith.constant 16 : i32
    %c0_i32 = arith.constant 0 : i32
    %4 = arith.cmpi eq, %c16_i32, %c0_i32 : i32
    %c1_i32 = arith.constant 1 : i32
    %5 = arith.select %4, %c1_i32, %c16_i32 : i32
    %6 = vector.broadcast %5 : i32 to vector<16x128xi32>
    %7 = arith.remsi %3, %6 : vector<16x128xi32>
    %c0_i32_2 = arith.constant 0 : i32
    %8 = vector.broadcast %c0_i32_2 : i32 to vector<16x128xi32>
    %9 = arith.cmpi ne, %7, %8 : vector<16x128xi32>
    %c0_i32_3 = arith.constant 0 : i32
    %10 = vector.broadcast %c0_i32_3 : i32 to vector<16x128xi32>
    %11 = arith.cmpi slt, %7, %10 : vector<16x128xi32>
    %c0_i32_4 = arith.constant 0 : i32
    %12 = arith.cmpi slt, %5, %c0_i32_4 : i32
    %13 = vector.broadcast %12 : i1 to vector<16x128xi1>
    %14 = vector.broadcast %13 : vector<16x128xi1> to vector<16x128xi1>
    %15 = arith.xori %11, %14 : vector<16x128xi1>
    %16 = arith.andi %15, %9 : vector<16x128xi1>
    %17 = vector.broadcast %5 : i32 to vector<16x128xi32>
    %18 = arith.addi %7, %17 : vector<16x128xi32>
    %19 = arith.select %16, %18, %7 : vector<16x128xi1>, vector<16x128xi32>
    %c1_i32_5 = arith.constant 1 : i32
    %20 = vector.broadcast %c1_i32_5 : i32 to vector<16x128xi32>
    %21 = arith.cmpi sge, %19, %20 : vector<16x128xi32>
    %c15_i32 = arith.constant 15 : i32
    %22 = vector.broadcast %c15_i32 : i32 to vector<16x128xi32>
    %23 = arith.cmpi slt, %19, %22 : vector<16x128xi32>
    %c1_i32_6 = arith.constant 1 : i32
    %24 = tpu.dynamic_rotate %2 by %c1_i32_6 dim 0 : vector<16x128xf32>, i32 -> vector<16x128xf32>
    %cst = arith.constant 0.000000e+00 : f32
    %25 = vector.broadcast %cst : f32 to vector<16x128xf32>
    %26 = arith.select %21, %24, %25 : vector<16x128xi1>, vector<16x128xf32>
    %c15_i32_7 = arith.constant 15 : i32
    %27 = tpu.dynamic_rotate %2 by %c15_i32_7 dim 0 : vector<16x128xf32>, i32 -> vector<16x128xf32>
    %cst_8 = arith.constant 0.000000e+00 : f32
    %28 = vector.broadcast %cst_8 : f32 to vector<16x128xf32>
    %29 = arith.select %23, %27, %28 : vector<16x128xi1>, vector<16x128xf32>
    %30 = tpu.concatenate %26, %2, %29 in 1 : vector<16x128xf32>, vector<16x128xf32>, vector<16x128xf32> -> vector<16x384xf32>
    %31 = arith.truncf %30 : vector<16x384xf32> to vector<16x384xbf16>
    %c0_9 = arith.constant 0 : index
    %c0_10 = arith.constant 0 : index
    %32 = vector.load %arg2[%c0_9, %c0_10] : memref<384x128xbf16, #tpu.memory_space<vmem>>, vector<384x128xbf16>
    %cst_11 = arith.constant dense<0.000000e+00> : vector<16x128xf32>
    %33 = tpu.matmul %31, %32, %cst_11 {dimension_numbers = #tpu.dot_dimension_numbers<[1], [0], [0], [1], [0, 0, 1, 1], [], []>} : vector<16x384xbf16>, vector<384x128xbf16>, vector<16x128xf32> -> vector<16x128xf32>
    %c0_12 = arith.constant 0 : index
    %c0_13 = arith.constant 0 : index
    %34 = vector.load %arg3[%c0_12, %c0_13] : memref<1x128xf32, #tpu.memory_space<vmem>>, vector<1x128xf32>
    %35 = vector.broadcast %34 : vector<1x128xf32> to vector<16x128xf32>
    %36 = arith.addf %33, %35 : vector<16x128xf32>
    %cst_14 = arith.constant 0.000000e+00 : f32
    %37 = vector.broadcast %cst_14 : f32 to vector<16x128xf32>
    %38 = arith.maximumf %36, %37 : vector<16x128xf32>
    %c1_i32_15 = arith.constant 1 : i32
    %39 = tpu.dynamic_rotate %38 by %c1_i32_15 dim 0 : vector<16x128xf32>, i32 -> vector<16x128xf32>
    %cst_16 = arith.constant 0.000000e+00 : f32
    %40 = vector.broadcast %cst_16 : f32 to vector<16x128xf32>
    %41 = arith.select %21, %39, %40 : vector<16x128xi1>, vector<16x128xf32>
    %c15_i32_17 = arith.constant 15 : i32
    %42 = tpu.dynamic_rotate %38 by %c15_i32_17 dim 0 : vector<16x128xf32>, i32 -> vector<16x128xf32>
    %cst_18 = arith.constant 0.000000e+00 : f32
    %43 = vector.broadcast %cst_18 : f32 to vector<16x128xf32>
    %44 = arith.select %23, %42, %43 : vector<16x128xi1>, vector<16x128xf32>
    %45 = tpu.concatenate %41, %38, %44 in 1 : vector<16x128xf32>, vector<16x128xf32>, vector<16x128xf32> -> vector<16x384xf32>
    %46 = arith.truncf %45 : vector<16x384xf32> to vector<16x384xbf16>
    %c0_19 = arith.constant 0 : index
    %c0_20 = arith.constant 0 : index
    %47 = vector.load %arg4[%c0_19, %c0_20] : memref<384x128xbf16, #tpu.memory_space<vmem>>, vector<384x128xbf16>
    %cst_21 = arith.constant dense<0.000000e+00> : vector<16x128xf32>
    %48 = tpu.matmul %46, %47, %cst_21 {dimension_numbers = #tpu.dot_dimension_numbers<[1], [0], [0], [1], [0, 0, 1, 1], [], []>} : vector<16x384xbf16>, vector<384x128xbf16>, vector<16x128xf32> -> vector<16x128xf32>
    %c0_22 = arith.constant 0 : index
    %c0_23 = arith.constant 0 : index
    %49 = vector.load %arg5[%c0_22, %c0_23] : memref<1x128xf32, #tpu.memory_space<vmem>>, vector<1x128xf32>
    %50 = vector.broadcast %49 : vector<1x128xf32> to vector<16x128xf32>
    %51 = arith.addf %48, %50 : vector<16x128xf32>
    %52 = arith.addf %51, %2 : vector<16x128xf32>
    %cst_24 = arith.constant 0.000000e+00 : f32
    %53 = vector.broadcast %cst_24 : f32 to vector<16x128xf32>
    %54 = arith.maximumf %52, %53 : vector<16x128xf32>
    %55 = arith.truncf %54 : vector<16x128xf32> to vector<16x128xbf16>
    %c0_25 = arith.constant 0 : index
    %c0_26 = arith.constant 0 : index
    %c0_27 = arith.constant 0 : index
    %56 = vector.load %arg6[%c0_25, %c0_26, %c0_27] : memref<1x16x128xbf16, #tpu.memory_space<vmem>>, vector<1x16x128xbf16>
    %57 = vector.shape_cast %56 : vector<1x16x128xbf16> to vector<16x128xbf16>
    %58 = vector.shape_cast %55 : vector<16x128xbf16> to vector<1x16x128xbf16>
    tpu.vector_store %arg6[%c0_25, %c0_26, %c0_27], %58 {strides = array<i32>} : memref<1x16x128xbf16, #tpu.memory_space<vmem>>, vector<1x16x128xbf16>,
    return
  }
  func.func @transform_0(%arg0: i32) -> (i32, i32, i32) {
    %c0_i32 = arith.constant 0 : i32
    %c0_i32_0 = arith.constant 0 : i32
    %c0_i32_1 = arith.constant 0 : i32
    return %arg0, %c0_i32, %c0_i32_0 : i32, i32, i32
  }
  func.func @transform_1(%arg0: i32) -> (i32, i32) {
    %c0_i32 = arith.constant 0 : i32
    %c0_i32_0 = arith.constant 0 : i32
    %c0_i32_1 = arith.constant 0 : i32
    return %c0_i32, %c0_i32_0 : i32, i32
  }
  func.func @transform_2(%arg0: i32) -> (i32, i32) {
    %c0_i32 = arith.constant 0 : i32
    %c0_i32_0 = arith.constant 0 : i32
    %c0_i32_1 = arith.constant 0 : i32
    return %c0_i32, %c0_i32_0 : i32, i32
  }
  func.func @transform_3(%arg0: i32) -> (i32, i32) {
    %c0_i32 = arith.constant 0 : i32
    %c0_i32_0 = arith.constant 0 : i32
    %c0_i32_1 = arith.constant 0 : i32
    return %c0_i32, %c0_i32_0 : i32, i32
  }
  func.func @transform_4(%arg0: i32) -> (i32, i32) {
    %c0_i32 = arith.constant 0 : i32
    %c0_i32_0 = arith.constant 0 : i32
    %c0_i32_1 = arith.constant 0 : i32
    return %c0_i32, %c0_i32_0 : i32, i32
  }
  func.func @transform_5(%arg0: i32) -> (i32, i32, i32) {
    %c0_i32 = arith.constant 0 : i32
    %c0_i32_0 = arith.constant 0 : i32
    %c0_i32_1 = arith.constant 0 : i32
    return %arg0, %c0_i32, %c0_i32_0 : i32, i32, i32
  }
}

</mosaic_0001>

<bundles_post_ra>
// kernel: tpu_custom_call.1
= control target key start
LH: loop header
LB: loop body
LE: loop exit
PB: predicated region body
PF: predicated region fallthrough
CT: control target
= control target key end

     0   :  { %10 = vsyncpa [#allocation3], 0  ;;  %s1194_s0 = inlined_call_operand.hbm [shape: bf16[1,16,128], index: 0, kind: input, shape index: {}]   ;;  %s1195_s1 = inlined_call_operand.hbm [shape: bf16[384,128], index: 1, kind: input, shape index: {}]   ;;  %s1196_s2 = inlined_call_operand.vmem [shape: f32[1,128], index: 2, kind: input, shape index: {}]   ;;  %s1197_s3 = inlined_call_operand.hbm [shape: bf16[384,128], index: 3, kind: input, shape index: {}]   ;;  %s1198_s4 = inlined_call_operand.vmem [shape: f32[1,128], index: 4, kind: input, shape index: {}]   ;;  %s1199_s5 = inlined_call_operand.hbm [shape: bf16[1,16,128], index: 5, kind: output, shape index: {}]  }
   0x1   :  { %11 = vsyncpa [#allocation6], 0 }
   0x2   :  { %12 = vsyncpa [#allocation4], 0  ;;  %s1045_s18 = smov [#allocation5]   ;;  %s1046_s20 = smov [#allocation2]  }
   0x3   :  { %s30_s19 = sshll.u32 %s1045_s18, 4  ;;  %s18_s21 = sshll.u32 %s1046_s20, 4  ;;  %s31_s19 = int_to_ptr.vmem [resolvable:$true] %s30_s19  ;;  %s19_s21 = int_to_ptr.vmem [resolvable:$true] %s18_s21 }
   0x4   :  { %s967_s22 = scalar_lea.vmem %s31_s19, 3072  ;;  %p972_p1 = scmp.lt.s32.totalorder %s31_s19, %s31_s19 }
   0x5   :  { %p968_p0 = scmp.ne.s32.totalorder %s31_s19, %s967_s22  ;;  %p973_p2 = scmp.lt.s32.totalorder %s967_s22, %s967_s22 }
   0x7   :  { %p974_p3 = por %p973_p2, %p972_p1 }
   0x9   :  { %p975_p4 = pnand %p974_p3, %p968_p0 }
   0xb   :  { %978 = shalt.err (!%p975_p4)
}
   0xc   :  { %s1047_s23 = smov 64   ;;  %s1048_s24 = smov 4  }
   0xd   :  { %36 = dma.hbm_to_vmem [thread:$0]  %s1195_s1, 3072, %s31_s19, [#allocation6], %s1047_s23, %s1047_s23, %s1048_s24  }
   0xe   :  { %s987_s27 = scalar_lea.vmem %s19_s21, 128  ;;  %p992_p6 = scmp.lt.s32.totalorder %s19_s21, %s19_s21 }
   0xf   :  { %p988_p5 = scmp.ne.s32.totalorder %s19_s21, %s987_s27  ;;  %p993_p7 = scmp.lt.s32.totalorder %s987_s27, %s987_s27 }
  0x11   :  { %p994_p8 = por %p993_p7, %p992_p6 }
  0x13   :  { %p995_p9 = pnand %p994_p8, %p988_p5 }
  0x15   :  { %998 = shalt.err (!%p995_p9)
}
  0x16   :  { %24 = dma.hbm_to_vmem [thread:$0]  %s1194_s0, 128, %s19_s21, [#allocation3], %s1047_s23, %s1047_s23, %s1048_s24  }
  0x17   :  { %s1049_s30 = smov [#allocation7]  }
  0x18   :  { %s44_s6 = sshll.u32 %s1049_s30, 4  ;;  %s45_s6 = int_to_ptr.vmem [resolvable:$true] %s44_s6 }
  0x19   :  { %s1007_s7 = scalar_lea.vmem %s45_s6, 3072  ;;  %p1012_p11 = scmp.lt.s32.totalorder %s45_s6, %s45_s6 }
  0x1a   :  { %p1008_p10 = scmp.ne.s32.totalorder %s45_s6, %s1007_s7  ;;  %p1013_p12 = scmp.lt.s32.totalorder %s1007_s7, %s1007_s7 }
  0x1c   :  { %p1014_p13 = por %p1013_p12, %p1012_p11 }
  0x1e   :  { %p1015_p0 = pnand %p1014_p13, %p1008_p10 }
  0x20   :  { %1018 = shalt.err (!%p1015_p0)
}
  0x21   :  { %50 = dma.hbm_to_vmem [thread:$0]  %s1197_s3, 3072, %s45_s6, [#allocation6], %s1047_s23, %s1047_s23, %s1048_s24  }
  0x22   :  { %1039 = dma.done.wait [#allocation3], 128  }
  0x23   :  { %1040 = vsyncadd [#allocation3], 4294967168 }
  0x24   :  { %1041 = dma.done.wait [#allocation6], 6144  }
  0x25   :  { %1042 = vsyncadd [#allocation6], 4294961152  ;;  %v1050_v0 = vmov 0.0   ;;  %vm1051_vm0 = vmmov 0   ;;  %v909_v1 = vld [vmem:[#allocation5 + $0x78] sm:$0xff]   ;;  %v912_v4 = vld [vmem:[#allocation5 + $0x70] sm:$0xff]   ;;  %v67_v12 = vlaneseq }
  0x26   :  { %860 = vmatprep.subr.bf16.mxu1 %v1050_v0  ;;  %876 = vmatprep.mubr.msk.bf16.mxu1 %vm1051_vm0, %v1050_v0  ;;  %v910_v2 = vld [vmem:[#allocation5 + $0x38] sm:$0xff]   ;;  %v913_v5 = vld [vmem:[#allocation5 + $0x30] sm:$0xff]   ;;  %v915_v7 = vld [vmem:[#allocation5 + $0x68] sm:$0xff]   ;;  %vm1052_vm5 = vmmov 1   ;;  %s1053_s10 = smov [#allocation8]  }
  0x27   :  { %798 = vmatprep.subr.bf16.mxu0 %v909_v1  ;;  %v911_v3 = vld [vmem:[#allocation5 + $0xb8] sm:$0xff]   ;;  %v914_v6 = vld [vmem:[#allocation5 + $0xb0] sm:$0xff]   ;;  %v916_v8 = vld [vmem:[#allocation5 + $0x28] sm:$0xff]   ;;  %v1108_v16 = vshrl.u32 %v67_v12, 7  ;;  %s713_s11 = sshll.u32 %s1053_s10, 4  ;;  %s714_s11 = int_to_ptr.vmem [resolvable:$true] %s713_s11 }
  0x28   :  { %799 = vmatpush3.bf16.msra.mxu0 %v910_v2  ;;  %861 = vmatpush3.bf16.msra.mxu1 %v911_v3  ;;  %v917_v9 = vld [vmem:[#allocation5 + $0xa8] sm:$0xff]   ;;  %v918_v10 = vld [vmem:[#allocation5 + $0x60] sm:$0xff]   ;;  %v921_v14 = vld [vmem:[#allocation5 + $0x58] sm:$0xff]   ;;  %p1024_p2 = scmp.lt.s32.totalorder %s714_s11, %s714_s11 }
  0x29   :  { %800 = vmatprep.subr.bf16.mxu0 %v912_v4  ;;  %862 = vmatprep.subr.bf16.mxu1 %v1050_v0  ;;  %v919_v11 = vld [vmem:[#allocation5 + $0x20] sm:$0xff]   ;;  %v922_v15 = vld [vmem:[#allocation5 + $0x18] sm:$0xff]   ;;  %v924_v18 = vld [vmem:[#allocation5 + $0x50] sm:$0xff]   ;;  %v69_v20 = vadd.s32 8, %v1108_v16  ;;  %v74_v23 = vand.u32 15, %v1108_v16  ;;  %vm100_vm2 = vcmp.lt.s32.totalorder %v1108_v16, 1 }
  0x2a   :  { %v920_v13 = vld [vmem:[#allocation5 + $0xa0] sm:$0xff]   ;;  %v923_v17 = vld [vmem:[#allocation5 + $0x98] sm:$0xff]   ;;  %v925_v19 = vld [vmem:[#allocation5 + $0x10] sm:$0xff]   ;;  %vm107_vm3 = vcmp.lt.s32.totalorder %v1108_v16, 7 }
  0x2b   :  { %v926_v21 = vld [vmem:[#allocation5 + $0x90] sm:$0xff]   ;;  %v927_v22 = vld [vmem:[#allocation5 + $0x48] sm:$0xff]   ;;  %v81_v25 = vand.u32 15, %v69_v20  ;;  %v930_v27 = vld [vmem:[#allocation5 + $0x40] sm:$0xff]   ;;  %vm1114_vm1 = vcmp.ge.s32.totalorder %v74_v23, 1 }
  0x2c   :  { %801 = vmatpush3.bf16.msra.mxu0 %v913_v5  ;;  %863 = vmatpush3.bf16.msra.mxu1 %v914_v6  ;;  %v928_v24 = vld [vmem:[#allocation5 + $0x8] sm:$0xff]   ;;  %v63_v28 = vld [vmem:[#allocation2] sm:$0xff]   ;;  %v931_v30 = vld [vmem:[#allocation5] sm:$0xff]  }
  0x2d   :  { %802 = vmatprep.subr.bf16.mxu0 %v915_v7  ;;  %864 = vmatprep.subr.bf16.mxu1 %v1050_v0  ;;  %v929_v26 = vld [vmem:[#allocation5 + $0x88] sm:$0xff]   ;;  %v1120_v31 = vunpack.c.l.bf16 %v63_v28  ;;  %v1122_v32 = vunpack.c.h.bf16 %v63_v28  ;;  %v932_v33 = vld [vmem:[#allocation5 + $0x80] sm:$0xff]   ;;  %vm1125_vm4 = vcmp.lt.s32.totalorder %v81_v25, 15  ;;  %vm1135_vm6 = vmpackc.low %vm1052_vm5, %vm1114_vm1 }
  0x2e   :  { %346 = vmatprep.mubr.bf16.mxu0 %v63_v28  ;;  %v934_v40 = vld [vmem:[#allocation7 + $0x78] sm:$0xff]   ;;  %vm1150_vm7 = vmpackc.low %vm1125_vm4, %vm1052_vm5  ;;  %v937_v50 = vld [vmem:[#allocation7 + $0x70] sm:$0xff]  }
  0x2f   :  { %v98_v35 = vrot.slane %v1120_v31, 7  ;;  %v99_v36 = vrot.slane %v1122_v32, 7  ;;  %v105_v37 = vrot.slane %v1120_v31, 1  ;;  %v106_v38 = vrot.slane %v1122_v32, 1  ;;  %v935_v47 = vld [vmem:[#allocation7 + $0x38] sm:$0xff]   ;;  %v938_v51 = vld [vmem:[#allocation7 + $0x30] sm:$0xff]  }
  0x30   :  { %803 = vmatpush3.bf16.msra.mxu0 %v916_v8  ;;  %865 = vmatpush3.bf16.msra.mxu1 %v917_v9  ;;  %v936_v49 = vld [vmem:[#allocation7 + $0xb8] sm:$0xff]   ;;  %v939_v52 = vld [vmem:[#allocation7 + $0xb0] sm:$0xff]   ;;  %v940_v53 = vld [vmem:[#allocation7 + $0x68] sm:$0xff]  }
  0x31   :  { %804 = vmatprep.subr.bf16.mxu0 %v918_v10  ;;  %866 = vmatprep.subr.bf16.mxu1 %v1050_v0  ;;  %v101_v41 = vsel %vm100_vm2, %v98_v35, %v99_v36  ;;  %v102_v42 = vsel %vm100_vm2, %v99_v36, %v98_v35  ;;  %v108_v43 = vsel %vm107_vm3, %v105_v37, %v106_v38  ;;  %v941_v54 = vld [vmem:[#allocation7 + $0x28] sm:$0xff]   ;;  %v943_v56 = vld [vmem:[#allocation7 + $0x60] sm:$0xff]   ;;  %v946_v59 = vld [vmem:[#allocation7 + $0x58] sm:$0xff]  }
  0x32   :  { %v109_v44 = vsel %vm107_vm3, %v106_v38, %v105_v37  ;;  %v753_v46 = vpack.c.bf16 %v101_v41, %v102_v42  ;;  %v942_v55 = vld [vmem:[#allocation7 + $0xa8] sm:$0xff]   ;;  %v944_v57 = vld [vmem:[#allocation7 + $0x20] sm:$0xff]   ;;  %v947_v60 = vld [vmem:[#allocation7 + $0x18] sm:$0xff]  }
  0x33   :  { %v756_v48 = vpack.c.bf16 %v109_v44, %v108_v43  ;;  %v945_v58 = vld [vmem:[#allocation7 + $0xa0] sm:$0xff]   ;;  %v948_v61 = vld [vmem:[#allocation7 + $0x98] sm:$0xff]   ;;  %v949_v62 = vld [vmem:[#allocation7 + $0x50] sm:$0xff]  }
  0x34   :  { %805 = vmatpush3.bf16.msra.mxu0 %v919_v11  ;;  %867 = vmatpush3.bf16.msra.mxu1 %v920_v13  ;;  %v950_v63 = vld [vmem:[#allocation7 + $0x10] sm:$0xff]   ;;  %v952_v2 = vld [vmem:[#allocation7 + $0x48] sm:$0xff]   ;;  %v955_v5 = vld [vmem:[#allocation7 + $0x40] sm:$0xff]  }
  0x35   :  { %806 = vmatprep.subr.bf16.mxu0 %v921_v14  ;;  %868 = vmatprep.subr.bf16.mxu1 %v1050_v0  ;;  %v951_v1 = vld [vmem:[#allocation7 + $0x90] sm:$0xff]   ;;  %v953_v3 = vld [vmem:[#allocation7 + $0x8] sm:$0xff]   ;;  %v956_v6 = vld [vmem:[#allocation7] sm:$0xff]  }
  0x36   :  { %v954_v4 = vld [vmem:[#allocation7 + $0x88] sm:$0xff]   ;;  %v957_v7 = vld [vmem:[#allocation7 + $0x80] sm:$0xff]   ;;  %v727_v10 = vld [vmem:[%s1196_s2] ss:$0 sm:$0xff] }
  0x37   :  { %v758_v41 = vld [vmem:[%s1198_s4] ss:$0 sm:$0xff]  ;;  %s1019_s4 = scalar_lea.vmem %s714_s11, 128 }
  0x38   :  { %807 = vmatpush3.bf16.msra.mxu0 %v922_v15  ;;  %869 = vmatpush3.bf16.msra.mxu1 %v923_v17  ;;  %p1020_p1 = scmp.ne.s32.totalorder %s714_s11, %s1019_s4  ;;  %p1025_p3 = scmp.lt.s32.totalorder %s1019_s4, %s1019_s4 }
  0x39   :  { %808 = vmatprep.subr.bf16.mxu0 %v924_v18  ;;  %870 = vmatprep.subr.bf16.mxu1 %v1050_v0 }
  0x3a   :  { %p1026_p4 = por %p1025_p3, %p1024_p2 }
  0x3c   :  { %809 = vmatpush3.bf16.msra.mxu0 %v925_v19  ;;  %871 = vmatpush3.bf16.msra.mxu1 %v926_v21  ;;  %p1027_p5 = pnand %p1026_p4, %p1020_p1 }
  0x3d   :  { %810 = vmatprep.subr.bf16.mxu0 %v927_v22  ;;  %872 = vmatprep.subr.bf16.mxu1 %v1050_v0 }
  0x40   :  { %811 = vmatpush3.bf16.msra.mxu0 %v928_v24  ;;  %873 = vmatpush3.bf16.msra.mxu1 %v929_v26 }
  0x41   :  { %812 = vmatprep.subr.bf16.mxu0 %v930_v27  ;;  %874 = vmatprep.subr.bf16.mxu1 %v1050_v0 }
  0x44   :  { %813 = vmatpush3.bf16.msra.mxu0 %v931_v30  ;;  %875 = vmatpush3.bf16.msra.mxu1 %v932_v33 }
  0x45   :  { %829 = vmatprep.subr.bf16.mxu0 %v934_v40  ;;  %880 = vmatprep.subr.bf16.mxu1 %v1050_v0 }
  0x47   :  { %754 = vmatmul.mubr.msk.bf16.vlgmr.msra.gmra.mxu0 %vm1135_vm6, %v753_v46  ;;  %877 = vmatmul.mubr.msk.bf16.vlgmr.msra.gmra.mxu1 %vm1150_vm7, %v756_v48 }
  0x48   :  { %830 = vmatpush3.bf16.msra.mxu0 %v935_v47  ;;  %881 = vmatpush3.bf16.msra.mxu1 %v936_v49 }
  0x49   :  { %831 = vmatprep.subr.bf16.mxu0 %v937_v50  ;;  %882 = vmatprep.subr.bf16.mxu1 %v1050_v0 }
  0x4a   :  { %896 = vmatprep.mubr.msk.bf16.mxu1 %vm1051_vm0, %v1050_v0 }
  0x4c   :  { %832 = vmatpush3.bf16.msra.mxu0 %v938_v51  ;;  %883 = vmatpush3.bf16.msra.mxu1 %v939_v52 }
  0x4d   :  { %833 = vmatprep.subr.bf16.mxu0 %v940_v53  ;;  %884 = vmatprep.subr.bf16.mxu1 %v1050_v0 }
  0x50   :  { %834 = vmatpush3.bf16.msra.mxu0 %v941_v54  ;;  %885 = vmatpush3.bf16.msra.mxu1 %v942_v55 }
  0x51   :  { %886 = vmatprep.subr.bf16.mxu1 %v1050_v0  ;;  %835 = vmatprep.subr.bf16.mxu0 %v943_v56 }
  0x54   :  { %836 = vmatpush3.bf16.msra.mxu0 %v944_v57  ;;  %887 = vmatpush3.bf16.msra.mxu1 %v945_v58 }
  0x55   :  { %888 = vmatprep.subr.bf16.mxu1 %v1050_v0  ;;  %837 = vmatprep.subr.bf16.mxu0 %v946_v59 }
  0x58   :  { %838 = vmatpush3.bf16.msra.mxu0 %v947_v60  ;;  %889 = vmatpush3.bf16.msra.mxu1 %v948_v61 }
  0x59   :  { %890 = vmatprep.subr.bf16.mxu1 %v1050_v0  ;;  %839 = vmatprep.subr.bf16.mxu0 %v949_v62 }
  0x5c   :  { %840 = vmatpush3.bf16.msra.mxu0 %v950_v63  ;;  %891 = vmatpush3.bf16.msra.mxu1 %v951_v1 }
  0x5d   :  { %892 = vmatprep.subr.bf16.mxu1 %v1050_v0  ;;  %841 = vmatprep.subr.bf16.mxu0 %v952_v2 }
  0x60   :  { %842 = vmatpush3.bf16.msra.mxu0 %v953_v3  ;;  %893 = vmatpush3.bf16.msra.mxu1 %v954_v4 }
  0x61   :  { %894 = vmatprep.subr.bf16.mxu1 %v1050_v0  ;;  %843 = vmatprep.subr.bf16.mxu0 %v955_v5 }
  0x64   :  { %844 = vmatpush3.bf16.msra.mxu0 %v956_v6  ;;  %895 = vmatpush3.bf16.msra.mxu1 %v957_v7 }
 0x107   :  { %v814_v8 = vpop.f32.mrf.mxu0  ;;  %v389_v9 = vpop.f32.mrf.mxu1 }
 0x109   :  { %v815_v11 = vpop.f32.mrf.mxu0  ;;  %v878_v13 = vpop.f32.mrf.mxu1 }
 0x10a   :  { %v816_v12 = vadd.f32 %v815_v11, %v814_v8 }
 0x10b   :  { %v817_v14 = vpop.f32.mrf.mxu0  ;;  %v392_v17 = vpop.f32.mrf.mxu1 }
 0x10c   :  { %v349_v15 = vadd.f32 %v816_v12, %v727_v10 }
 0x10d   :  { %v818_v18 = vpop.f32.mrf.mxu0  ;;  %v879_v20 = vpop.f32.mrf.mxu1 }
 0x10e   :  { %v390_v19 = vadd.f32 %v389_v9, %v349_v15  ;;  %v819_v0 = vadd.f32 %v818_v18, %v817_v14 }
 0x110   :  { %v352_v21 = vadd.f32 %v819_v0, %v727_v10  ;;  %v396_v22 = vmax.f32 %v390_v19, 0.0 }
 0x112   :  { %v393_v23 = vadd.f32 %v392_v17, %v352_v21  ;;  %v398_v25 = vrot.slane %v396_v22, 7  ;;  %v404_v26 = vrot.slane %v396_v22, 1 }
 0x114   :  { %v397_v24 = vmax.f32 %v393_v23, 0.0 }
 0x116   :  { %v399_v27 = vrot.slane %v397_v24, 7  ;;  %v405_v28 = vrot.slane %v397_v24, 1  ;;  %v411_v29 = vpack.c.bf16 %v397_v24, %v396_v22 }
 0x118   :  { %644 = vmatprep.mubr.bf16.mxu0 %v411_v29  ;;  %v400_v30 = vsel %vm100_vm2, %v398_v25, %v399_v27  ;;  %v401_v33 = vsel %vm100_vm2, %v399_v27, %v398_v25  ;;  %v406_v34 = vsel %vm107_vm3, %v404_v26, %v405_v28  ;;  %v407_v35 = vsel %vm107_vm3, %v405_v28, %v404_v26 }
 0x119   :  { %v784_v36 = vpack.c.bf16 %v400_v30, %v401_v33  ;;  %v787_v37 = vpack.c.bf16 %v407_v35, %v406_v34 }
 0x11b   :  { %785 = vmatmul.mubr.msk.bf16.vlgmr.msra.gmra.mxu0 %vm1135_vm6, %v784_v36  ;;  %897 = vmatmul.mubr.msk.bf16.vlgmr.msra.gmra.mxu1 %vm1150_vm7, %v787_v37 }
 0x1db   :  { %v845_v38 = vpop.f32.mrf.mxu0  ;;  %v687_v40 = vpop.f32.mrf.mxu1 }
 0x1dd   :  { %v846_v42 = vpop.f32.mrf.mxu0  ;;  %v898_v43 = vpop.f32.mrf.mxu1 }
 0x1de   :  { %v847_v44 = vadd.f32 %v846_v42, %v845_v38 }
 0x1df   :  { %v848_v46 = vpop.f32.mrf.mxu0  ;;  %v690_v16 = vpop.f32.mrf.mxu1 }
 0x1e0   :  { %v647_v47 = vadd.f32 %v847_v44, %v758_v41 }
 0x1e1   :  { %v849_v48 = vpop.f32.mrf.mxu0  ;;  %v899_v49 = vpop.f32.mrf.mxu1 }
 0x1e2   :  { %v688_v50 = vadd.f32 %v687_v40, %v647_v47  ;;  %v850_v39 = vadd.f32 %v849_v48, %v848_v46 }
 0x1e4   :  { %v650_v51 = vadd.f32 %v850_v39, %v758_v41  ;;  %v694_v45 = vadd.f32 %v688_v50, %v1120_v31 }
 0x1e6   :  { %v691_v52 = vadd.f32 %v690_v16, %v650_v51  ;;  %v696_v54 = vmax.f32 %v694_v45, 0.0 }
 0x1e8   :  { %v695_v53 = vadd.f32 %v691_v52, %v1122_v32 }
 0x1ea   :  { %v697_v55 = vmax.f32 %v695_v53, 0.0 }
 0x1ec   :  { %v796_v56 = vpack.c.bf16 %v697_v55, %v696_v54 }
 0x1ee   :  { %797 = vst [vmem:[#allocation8] sm:$0xff] %v796_v56  }
 0x1ef   :  { %1030 = shalt.err (!%p1027_p5)
}
 0x1f0   :  { %719 = dma.vmem_to_hbm [thread:$0]  %s714_s11, 128, %s1199_s5, [#allocation4], %s1047_s23, %s1047_s23, %s1048_s24  }
 0x1f1   :  { %1043 = dma.done.wait [#allocation4], 128  }
 0x1f2   :  { %1044 = vsyncadd [#allocation4], 4294967168 }
 0x1f3   :  { %723 = vsyncpa [#allocation3], 1 }
 0x1f4   :  { %724 = vsyncpa [#allocation6], 1 }
 0x1f5   :  { %725 = vsyncpa [#allocation4], 1 }

</bundles_post_ra>
